<compile_context>
chip_gen: v7x
topology: tpu7x:2x2x1
jax: 0.10.0
libtpu: 0.0.40
codegen_flags: <defaults>
</compile_context>

<pallas_src>
import functools

import jax
import jax.numpy as jnp
from jax import lax
from jax.experimental import pallas as pl
from jax.experimental.pallas import tpu as pltpu


# ---------------------------------------------------------------------------
# Generation-aware configuration.
# ---------------------------------------------------------------------------
def _tpu_generation():
    try:
        kind = jax.devices()[0].device_kind.lower()
    except Exception:
        return "unknown"
    for tag, gen in (("v7", "v7"), ("7x", "v7"), ("v6", "v6"), ("v5", "v5")):
        if tag in kind:
            return gen
    return "unknown"


_GEN = _tpu_generation()
if _GEN == "v7":          # 2 TCs, 64 MiB VMEM, ~3.2 TB/s HBM
    _NUM_CORES = 2
    _REDUCE_TILE = 2 * 1024 * 1024     # 8 MiB f32 / input buffer
    _NONE_TILE = 1024 * 1024           # 4 MiB f32 / stream (3 streams x 2 bufs)
    _REDUCE_VMEM_LIMIT = 48 << 20
    _NONE_VMEM_LIMIT = None
elif _GEN == "v6":        # 1 TC, 128 MiB VMEM (32 MiB default scoped)
    _NUM_CORES = 1
    _REDUCE_TILE = 1024 * 1024         # 4 MiB / buffer -> 16 MiB double-buffered
    _NONE_TILE = 1024 * 1024           # 24 MiB double-buffered
    _REDUCE_VMEM_LIMIT = None
    _NONE_VMEM_LIMIT = None
else:                     # v5e / unknown: 16 MiB default scoped VMEM, be conservative
    _NUM_CORES = 1
    _REDUCE_TILE = 512 * 1024          # 2 MiB / buffer -> 8 MiB
    _NONE_TILE = 256 * 1024            # 1 MiB / stream -> 6 MiB
    _REDUCE_VMEM_LIMIT = None
    _NONE_VMEM_LIMIT = None

_SMALL_N_THRESHOLD = 1 << 20   # below this, plain XLA beats pallas_call overhead


# ---------------------------------------------------------------------------
# Helpers.
# ---------------------------------------------------------------------------
def _as_f32(x):
    return x if x.dtype == jnp.float32 else x.astype(jnp.float32)


def _xla_mse(pred, target, reduction):
    d = _as_f32(pred) - _as_f32(target)
    sq = d * d
    if reduction == "mean":
        return jnp.mean(sq).astype(pred.dtype)
    if reduction == "sum":
        return jnp.sum(sq).astype(pred.dtype)
    return sq.astype(pred.dtype)


def _plan_cols(n_main):
    """Widest lane-dense column count dividing n_main (n_main % 128 == 0)."""
    for c in (1024, 512, 256, 128):
        if n_main % c == 0:
            return c
    return 128  # unreachable: n_main is always a multiple of 128


def _plan_tile_rows(rows, cols, target_elems):
    """Tile rows: full extent, or a multiple of 8 (the (8,128) constraint)."""
    tr = min(max(1, target_elems // cols), rows)
    if tr < rows:
        tr = max((tr // 8) * 8, min(8, rows))
    return tr


def _compiler_params(dim_semantics, vmem_limit):
    kw = dict(dimension_semantics=dim_semantics)
    if vmem_limit is not None:
        kw["vmem_limit_bytes"] = vmem_limit
    return pltpu.CompilerParams(**kw)


# ---------------------------------------------------------------------------
# Kernels.
# ---------------------------------------------------------------------------
def _mse_reduce_kernel(p_ref, t_ref, out_ref, acc_ref, *, rows, tr, steps,
                       core_split, first_masked_blk, needs_mask):
    if core_split:
        c = pl.program_id(0)              # TensorCore split ('parallel')
        i = pl.program_id(1)              # reduction axis ('arbitrary')
        last_i = pl.num_programs(1) - 1
    else:
        c = 0
        i = pl.program_id(0)
        last_i = pl.num_programs(0) - 1

    @pl.when(i == 0)
    def _():
        acc_ref[...] = jnp.zeros_like(acc_ref)

    diff = _as_f32(p_ref[...]) - _as_f32(t_ref[...])
    sq = diff * diff

    def _fold(x):
        # Fold the (tr, cols) tile down to the small (8, cols) accumulator with
        # pure VPU vreg adds (the major-dim reshape is layout-preserving).  The
        # only cross-lane/sublane reduce happens once, in the epilogue.
        if tr > 8 and tr % 8 == 0:
            return x.reshape(tr // 8, 8, x.shape[-1]).sum(axis=0)
        return x

    if needs_mask:
        blk = c * steps + i
        is_edge = blk >= first_masked_blk   # last partial block or phantom block

        @pl.when(jnp.logical_not(is_edge))
        def _():
            acc_ref[...] += _fold(sq)       # full blocks: unmasked accumulate

        @pl.when(is_edge)
        def _():
            row_ids = blk * tr + lax.broadcasted_iota(jnp.int32, sq.shape, 0)
            acc_ref[...] += _fold(jnp.where(row_ids < rows, sq, 0.0))
    else:
        acc_ref[...] += _fold(sq)

    @pl.when(i == last_i)
    def _():
        out_ref[...] = jnp.sum(acc_ref[...]).reshape(1, 1, 1)


def _mse_elementwise_kernel(p_ref, t_ref, out_ref):
    diff = _as_f32(p_ref[...]) - _as_f32(t_ref[...])
    out_ref[...] = (diff * diff).astype(out_ref.dtype)


# ---------------------------------------------------------------------------
# Public wrapper (matches CustomMSELoss.forward semantics).
# ---------------------------------------------------------------------------
def custom_mse_loss(pred, target, reduction="mean", *,
                    small_n_threshold=_SMALL_N_THRESHOLD,
                    reduce_tile_elems=None, none_tile_elems=None):
    assert pred.shape == target.shape
    n = pred.size
    if n == 0 or n < max(small_n_threshold, 128):
        # Small-n fast path: pallas_call fixed cost dominates; XLA fuses this.
        return _xla_mse(pred, target, reduction)

    p_flat = pred.reshape(-1)
    t_flat = target.reshape(-1)
    tail = n % 128
    n_main = n - tail            # kernel-covered region; tail (<128) done in JAX
    cols = _plan_cols(n_main)
    rows = n_main // cols
    # Metadata-only reshape when tail == 0; ragged shapes pay one prefix-slice
    # copy per input (still cheaper than the old pad + output-recopy fallback).
    p2 = (p_flat[:n_main] if tail else p_flat).reshape(rows, cols)
    t2 = (t_flat[:n_main] if tail else t_flat).reshape(rows, cols)

    if reduction == "none":
        tile_elems = none_tile_elems or _NONE_TILE
        tr = _plan_tile_rows(rows, cols, tile_elems)
        nblocks = pl.cdiv(rows, tr)
        out = pl.pallas_call(
            _mse_elementwise_kernel,
            out_shape=jax.ShapeDtypeStruct((rows, cols), pred.dtype),
            grid_spec=pltpu.PrefetchScalarGridSpec(
                num_scalar_prefetch=0,
                grid=(nblocks,),
                in_specs=[pl.BlockSpec((tr, cols), lambda i: (i, 0)),
                          pl.BlockSpec((tr, cols), lambda i: (i, 0))],
                out_specs=pl.BlockSpec((tr, cols), lambda i: (i, 0)),
            ),
            compiler_params=_compiler_params(("parallel",), _NONE_VMEM_LIMIT),
            cost_estimate=pl.CostEstimate(
                flops=2 * n_main, transcendentals=0,
                bytes_accessed=n_main * (pred.dtype.itemsize
                                         + target.dtype.itemsize
                                         + pred.dtype.itemsize)),
        )(p2, t2)
        # NOTE: a partial last block deliberately computes on uninitialized VMEM
        # rows; Pallas drops the out-of-bounds writes (no FP traps on TPU).
        if tail == 0:
            return out.reshape(pred.shape)           # free reshape, no copy
        d = _as_f32(p_flat[n_main:]) - _as_f32(t_flat[n_main:])
        tail_sq = (d * d).astype(pred.dtype)
        return jnp.concatenate([out.reshape(-1), tail_sq]).reshape(pred.shape)

    # reduction in {'mean', 'sum'}
    tile_elems = reduce_tile_elems or _REDUCE_TILE
    tr = _plan_tile_rows(rows, cols, tile_elems)
    nblocks = pl.cdiv(rows, tr)

    core_split = (_NUM_CORES > 1) and (nblocks > 1)
    if core_split:
        steps = pl.cdiv(nblocks, _NUM_CORES)
        grid = (_NUM_CORES, steps)
        dim_sem = ("parallel", "arbitrary")
        # Clamp phantom blocks of the core split; their contribution is masked.
        in_map = lambda c, i: (jnp.minimum(c * steps + i, nblocks - 1), 0)
        out_spec = pl.BlockSpec((1, 1, 1), lambda c, i: (c, 0, 0))
        out_rows = _NUM_CORES
        needs_mask = (_NUM_CORES * steps * tr) != rows
    else:
        steps = nblocks
        grid = (nblocks,)
        dim_sem = ("arbitrary",)
        in_map = lambda i: (i, 0)
        out_spec = pl.BlockSpec((1, 1, 1), lambda i: (0, 0, 0))
        out_rows = 1
        needs_mask = (nblocks * tr) != rows

    first_masked_blk = (nblocks - 1) if (rows % tr) != 0 else nblocks
    acc_rows = 8 if (tr >= 8 and tr % 8 == 0) else tr

    kernel = functools.partial(
        _mse_reduce_kernel, rows=rows, tr=tr, steps=steps,
        core_split=core_split, first_masked_blk=first_masked_blk,
        needs_mask=needs_mask)

    partials = pl.pallas_call(
        kernel,
        out_shape=jax.ShapeDtypeStruct((out_rows, 1, 1), jnp.float32),
        grid_spec=pltpu.PrefetchScalarGridSpec(
            num_scalar_prefetch=0,
            grid=grid,
            in_specs=[pl.BlockSpec((tr, cols), in_map),
                      pl.BlockSpec((tr, cols), in_map)],
            out_specs=out_spec,
            scratch_shapes=[pltpu.VMEM((acc_rows, cols), jnp.float32)],
        ),
        compiler_params=_compiler_params(dim_sem, _REDUCE_VMEM_LIMIT),
        cost_estimate=pl.CostEstimate(
            flops=3 * n_main, transcendentals=0,
            bytes_accessed=n_main * (pred.dtype.itemsize
                                     + target.dtype.itemsize) + 8),
    )(p2, t2)

    total = jnp.sum(partials)
    if tail:
        d = _as_f32(p_flat[n_main:]) - _as_f32(t_flat[n_main:])
        total = total + jnp.sum(d * d)
    if reduction == "mean":
        total = total / float(n)
    return total.astype(pred.dtype)


# ---------------------------------------------------------------------------
# Demo / correctness checks.
# ---------------------------------------------------------------------------
if __name__ == "__main__":
    key = jax.random.PRNGKey(0)
    k1, k2 = jax.random.split(key)
    # NCHW, like the PyTorch module would typically consume.
    pred = jax.random.normal(k1, (2, 4, 16, 16), dtype=jnp.float32)
    target = jax.random.normal(k2, (2, 4, 16, 16), dtype=jnp.float32)
    ref = (pred - target) ** 2

    # Force the Pallas path (the default small-n threshold would route these
    # tiny demo shapes through the XLA fast path).
    loss_mean = jax.block_until_ready(
        custom_mse_loss(pred, target, "mean", small_n_threshold=0))
    loss_sum = jax.block_until_ready(
        custom_mse_loss(pred, target, "sum", small_n_threshold=0))
    loss_none = jax.block_until_ready(
        custom_mse_loss(pred, target, "none", small_n_threshold=0))
    assert jnp.allclose(loss_mean, ref.mean(), rtol=1e-5, atol=1e-6)
    assert jnp.allclose(loss_sum, ref.sum(), rtol=1e-5, atol=1e-4)
    assert loss_none.shape == pred.shape
    assert jnp.allclose(loss_none, ref, rtol=1e-5, atol=1e-6)

    # Default path (small-n XLA fast path) must agree too.
    assert jnp.allclose(custom_mse_loss(pred, target, "mean"),
                        ref.mean(), rtol=1e-5, atol=1e-6)

    k3, k4 = jax.random.split(k1)

    # Ragged element count (1155 = 9*128 + 3): kernel main region + JAX tail.
    p2 = jax.random.normal(k3, (3, 5, 7, 11), dtype=jnp.float32)
    t2 = jax.random.normal(k4, (3, 5, 7, 11), dtype=jnp.float32)
    r2 = (p2 - t2) ** 2
    assert jnp.allclose(custom_mse_loss(p2, t2, "mean", small_n_threshold=0,
                                        reduce_tile_elems=1024),
                        r2.mean(), rtol=1e-5, atol=1e-6)
    assert jnp.allclose(custom_mse_loss(p2, t2, "sum", small_n_threshold=0,
                                        reduce_tile_elems=1024),
                        r2.sum(), rtol=1e-5, atol=1e-3)
    assert jnp.allclose(custom_mse_loss(p2, t2, "none", small_n_threshold=0,
                                        none_tile_elems=1024),
                        r2, rtol=1e-5, atol=1e-6)

    # rows=20 with tile rows=8: partial last block (+ phantom block on v7x).
    p3 = jax.random.normal(k3, (1, 1, 20, 1024), dtype=jnp.float32)
    t3 = jax.random.normal(k4, (1, 1, 20, 1024), dtype=jnp.float32)
    r3 = (p3 - t3) ** 2
    assert jnp.allclose(custom_mse_loss(p3, t3, "mean", small_n_threshold=0,
                                        reduce_tile_elems=8 * 1024),
                        r3.mean(), rtol=1e-5, atol=1e-6)
    assert jnp.allclose(custom_mse_loss(p3, t3, "sum", small_n_threshold=0,
                                        reduce_tile_elems=8 * 1024),
                        r3.sum(), rtol=1e-5, atol=1e-2)
    assert jnp.allclose(custom_mse_loss(p3, t3, "none", small_n_threshold=0,
                                        none_tile_elems=8 * 1024),
                        r3, rtol=1e-5, atol=1e-6)

    jax.block_until_ready(loss_none)
    print("KERNEL_OK")
</pallas_src>

<mosaic_0001>
module attributes {stable_mosaic.version = 11 : i64} {
  func.func @_mse_reduce_kernel(%arg0: i32, %arg1: memref<2x1024xf32, #tpu.memory_space<vmem>>, %arg2: memref<2x1024xf32, #tpu.memory_space<vmem>>, %arg3: memref<1x1x1xf32, #tpu.memory_space<vmem>>, %arg4: memref<2x1024xf32, #tpu.memory_space<vmem>>) attributes {dimension_semantics = [#tpu.dimension_semantics<arbitrary>], iteration_bounds = array<i64: 1>, scalar_prefetch = 0 : i64, scratch_operands = 1 : i64, tpu.core_type = #tpu.core_type<tc>, window_params = [{transform_indices = @transform_0, window_bounds = array<i64: 2, 1024>}, {transform_indices = @transform_1, window_bounds = array<i64: 2, 1024>}, {pipeline_mode = #tpu.pipeline_mode<synchronous>, transform_indices = @transform_2, window_bounds = array<i64: 1, 1, 1>}]} {
    %c0_i32 = arith.constant 0 : i32
    %0 = arith.cmpi eq, %arg0, %c0_i32 : i32
    %1 = arith.extui %0 : i1 to i32
    %c0_i32_0 = arith.constant 0 : i32
    %2 = arith.cmpi ne, %1, %c0_i32_0 : i32
    scf.if %2 {
      %cst = arith.constant 0.000000e+00 : f32
      %13 = vector.broadcast %cst : f32 to vector<2x1024xf32>
      %c0_10 = arith.constant 0 : index
      %c0_11 = arith.constant 0 : index
      %14 = vector.load %arg4[%c0_10, %c0_11] : memref<2x1024xf32, #tpu.memory_space<vmem>>, vector<2x1024xf32>
      tpu.vector_store %arg4[%c0_10, %c0_11], %13 {strides = array<i32>} : memref<2x1024xf32, #tpu.memory_space<vmem>>, vector<2x1024xf32>,
    } else {
    }
    %c0 = arith.constant 0 : index
    %c0_1 = arith.constant 0 : index
    %3 = vector.load %arg1[%c0, %c0_1] : memref<2x1024xf32, #tpu.memory_space<vmem>>, vector<2x1024xf32>
    %c0_2 = arith.constant 0 : index
    %c0_3 = arith.constant 0 : index
    %4 = vector.load %arg2[%c0_2, %c0_3] : memref<2x1024xf32, #tpu.memory_space<vmem>>, vector<2x1024xf32>
    %5 = arith.subf %3, %4 : vector<2x1024xf32>
    %6 = arith.mulf %5, %5 : vector<2x1024xf32>
    %c0_4 = arith.constant 0 : index
    %c0_5 = arith.constant 0 : index
    %7 = vector.load %arg4[%c0_4, %c0_5] : memref<2x1024xf32, #tpu.memory_space<vmem>>, vector<2x1024xf32>
    %8 = arith.addf %7, %6 : vector<2x1024xf32>
    %c0_6 = arith.constant 0 : index
    %c0_7 = arith.constant 0 : index
    %9 = vector.load %arg4[%c0_6, %c0_7] : memref<2x1024xf32, #tpu.memory_space<vmem>>, vector<2x1024xf32>
    tpu.vector_store %arg4[%c0_6, %c0_7], %8 {strides = array<i32>} : memref<2x1024xf32, #tpu.memory_space<vmem>>, vector<2x1024xf32>,
    %c0_i32_8 = arith.constant 0 : i32
    %10 = arith.cmpi eq, %arg0, %c0_i32_8 : i32
    %11 = arith.extui %10 : i1 to i32
    %c0_i32_9 = arith.constant 0 : i32
    %12 = arith.cmpi ne, %11, %c0_i32_9 : i32
    scf.if %12 {
      %c0_10 = arith.constant 0 : index
      %c0_11 = arith.constant 0 : index
      %13 = vector.load %arg4[%c0_10, %c0_11] : memref<2x1024xf32, #tpu.memory_space<vmem>>, vector<2x1024xf32>
      %14 = vector.shape_cast %13 : vector<2x1024xf32> to vector<1x2x1024xf32>
      %cst = arith.constant dense<0.000000e+00> : vector<1xf32>
      %15 = vector.multi_reduction <add>, %14, %cst [1, 2] : vector<1x2x1024xf32> to vector<1xf32>
      %16 = vector.shape_cast %15 : vector<1xf32> to vector<1x1x1xf32>
      %17 = vector.extract %16[0, 0, 0] : f32 from vector<1x1x1xf32>
      %18 = vector.broadcast %17 : f32 to vector<1x1x1xf32>
      %c0_12 = arith.constant 0 : index
      %c0_13 = arith.constant 0 : index
      %c0_14 = arith.constant 0 : index
      %19 = vector.load %arg3[%c0_12, %c0_13, %c0_14] : memref<1x1x1xf32, #tpu.memory_space<vmem>>, vector<1x1x1xf32>
      tpu.vector_store %arg3[%c0_12, %c0_13, %c0_14], %18 {strides = array<i32>} : memref<1x1x1xf32, #tpu.memory_space<vmem>>, vector<1x1x1xf32>,
    } else {
    }
    return
  }
  func.func @transform_0(%arg0: i32) -> (i32, i32) {
    %c0_i32 = arith.constant 0 : i32
    %c0_i32_0 = arith.constant 0 : i32
    return %arg0, %c0_i32 : i32, i32
  }
  func.func @transform_1(%arg0: i32) -> (i32, i32) {
    %c0_i32 = arith.constant 0 : i32
    %c0_i32_0 = arith.constant 0 : i32
    return %arg0, %c0_i32 : i32, i32
  }
  func.func @transform_2(%arg0: i32) -> (i32, i32, i32) {
    %c0_i32 = arith.constant 0 : i32
    %c0_i32_0 = arith.constant 0 : i32
    %c0_i32_1 = arith.constant 0 : i32
    %c0_i32_2 = arith.constant 0 : i32
    return %c0_i32, %c0_i32_0, %c0_i32_1 : i32, i32, i32
  }
}

</mosaic_0001>

<bundles_post_ra>
// kernel: tpu_custom_call.1
= control target key start
LH: loop header
LB: loop body
LE: loop exit
PB: predicated region body
PF: predicated region fallthrough
CT: control target
= control target key end

     0   :  { %7 = vsyncpa [#allocation4], 0  ;;  %s290_s0 = inlined_call_operand.hbm [shape: f32[2,1024], index: 0, kind: input, shape index: {}]   ;;  %s291_s1 = inlined_call_operand.hbm [shape: f32[2,1024], index: 1, kind: input, shape index: {}]   ;;  %s292_s2 = inlined_call_operand.hbm [shape: f32[1,1,1], index: 2, kind: output, shape index: {}]  }
   0x1   :  { %8 = vsyncpa [#allocation7], 0 }
   0x2   :  { %9 = vsyncpa [#allocation5], 0  ;;  %s227_s9 = smov [#allocation3]   ;;  %s228_s11 = smov [#allocation6]  }
   0x3   :  { %s16_s10 = sshll.u32 %s227_s9, 4  ;;  %s26_s12 = sshll.u32 %s228_s11, 4  ;;  %s17_s10 = int_to_ptr.vmem [resolvable:$true] %s16_s10  ;;  %s27_s12 = int_to_ptr.vmem [resolvable:$true] %s26_s12 }
   0x4   :  { %s155_s15 = scalar_lea.hbm %s290_s0, 256 }
   0x5   :  { %p156_p0 = scmp.ne.s32.totalorder %s290_s0, %s155_s15  ;;  %p159_p1 = scmp.lt.u32.totalorder %s155_s15, %s290_s0 }
   0x7   :  { %p161_p2 = pnand %p159_p1, %p156_p0 }
   0x9   :  { %164 = shalt.err (!%p161_p2)
}
   0xa   :  { %s165_s20 = scalar_lea.vmem %s17_s10, 256  ;;  %p170_p4 = scmp.lt.s32.totalorder %s17_s10, %s17_s10 }
   0xb   :  { %p166_p3 = scmp.ne.s32.totalorder %s17_s10, %s165_s20  ;;  %p171_p5 = scmp.lt.s32.totalorder %s165_s20, %s165_s20 }
   0xd   :  { %p172_p6 = por %p171_p5, %p170_p4 }
   0xf   :  { %p173_p7 = pnand %p172_p6, %p166_p3 }
  0x11   :  { %176 = shalt.err (!%p173_p7)
}
  0x12   :  { %19 = dma.hbm_to_vmem [thread:$0]  %s290_s0, 256, %s17_s10, [#allocation4]  }
  0x13   :  { %s177_s25 = scalar_lea.hbm %s291_s1, 256 }
  0x14   :  { %p178_p8 = scmp.ne.s32.totalorder %s291_s1, %s177_s25  ;;  %p181_p9 = scmp.lt.u32.totalorder %s177_s25, %s291_s1 }
  0x16   :  { %p183_p10 = pnand %p181_p9, %p178_p8 }
  0x18   :  { %186 = shalt.err (!%p183_p10)
}
  0x19   :  { %s187_s30 = scalar_lea.vmem %s27_s12, 256  ;;  %p192_p12 = scmp.lt.s32.totalorder %s27_s12, %s27_s12 }
  0x1a   :  { %p188_p11 = scmp.ne.s32.totalorder %s27_s12, %s187_s30  ;;  %p193_p13 = scmp.lt.s32.totalorder %s187_s30, %s187_s30 }
  0x1c   :  { %p194_p0 = por %p193_p13, %p192_p12 }
  0x1e   :  { %p195_p1 = pnand %p194_p0, %p188_p11 }
  0x20   :  { %198 = shalt.err (!%p195_p1)
}
  0x21   :  { %29 = dma.hbm_to_vmem [thread:$0]  %s291_s1, 256, %s27_s12, [#allocation7]  }
  0x22   :  { %221 = dma.done.wait [#allocation4], 256  }
  0x23   :  { %222 = vsyncadd [#allocation4], 4294967040 }
  0x24   :  { %223 = dma.done.wait [#allocation7], 256  }
  0x25   :  { %224 = vsyncadd [#allocation7], 4294967040  ;;  %v67_v0 = vlaneseq  ;;  %v229_v1 = vmov 1983009808   ;;  %v42_v5 = vld [vmem:[#allocation3] sm:$0xff]  ;;  %v43_v6 = vld [vmem:[#allocation3 + $0x8] sm:$0xff] }
  0x26   :  { %v65_v2 = vunpack.c.l.s4 %v229_v1  ;;  %v44_v7 = vld [vmem:[#allocation6] sm:$0xff]  ;;  %v45_v8 = vld [vmem:[#allocation6 + $0x8] sm:$0xff]  ;;  %vm105_vm0 = vcmask 1041408   ;;  %s230_s1 = smov [#allocation8]   ;;  %vm131_vm1 = vcmask 0  }
  0x27   :  { %v68_v4 = vshrl.u32 %v67_v0, 7  ;;  %v46_v9 = vsub.f32 %v42_v5, %v44_v7  ;;  %v47_v11 = vsub.f32 %v43_v6, %v45_v8  ;;  %s139_s4 = sshll.u32 %s230_s1, 4  ;;  %s140_s4 = int_to_ptr.vmem [resolvable:$true] %s139_s4 }
  0x28   :  { %v66_v3 = vunpack.c.0.s8 %v65_v2  ;;  %s199_s6 = scalar_lea.vmem %s140_s4, 16  ;;  %s203_s7 = scalar_lea.vmem %s140_s4, 32 }
  0x29   :  { %v48_v12 = vmul.f32 %v46_v9, %v46_v9  ;;  %v49_v13 = vmul.f32 %v47_v11, %v47_v11  ;;  %p200_p2 = scmp.ne.s32.totalorder %s140_s4, %s199_s6  ;;  %p204_p3 = scmp.lt.s32.totalorder %s140_s4, %s140_s4 }
  0x2a   :  { %v69_v10 = vsub.s32 %v66_v3, %v68_v4  ;;  %p205_p4 = scmp.lt.s32.totalorder %s203_s7, %s199_s6 }
  0x2b   :  { %v63_v14 = vcombine.high %v48_v12, %v48_v12  ;;  %v80_v16 = vcombine.high %v49_v13, %v49_v13 }
  0x2c   :  { %v70_v15 = vrot.slane %v48_v12, %v69_v10  ;;  %v87_v19 = vrot.slane %v49_v13, %v69_v10  ;;  %p206_p5 = por %p205_p4, %p204_p3 }
  0x2d   :  { %v77_v17 = vrot.slane %v63_v14, %v69_v10  ;;  %v94_v25 = vrot.slane %v80_v16, %v69_v10 }
  0x2e   :  { %v78_v18 = vcombine.high %v70_v15, %v70_v15  ;;  %v106_v20 = vsel %vm105_vm0, %v70_v15, 0.0  ;;  %v95_v26 = vcombine.high %v87_v19, %v87_v19  ;;  %v113_v29 = vsel %vm105_vm0, %v87_v19, 0.0  ;;  %p207_p6 = pnand %p206_p5, %p200_p2 }
  0x2f   :  { %v79_v21 = vcombine.high %v77_v17, %v77_v17  ;;  %v109_v23 = vsel %vm105_vm0, %v77_v17, 0.0  ;;  %v96_v31 = vcombine.high %v94_v25, %v94_v25  ;;  %v117_v34 = vsel %vm105_vm0, %v94_v25, 0.0 }
  0x30   :  { %v107_v22 = vsel %vm105_vm0, %v78_v18, 0.0  ;;  %v115_v32 = vsel %vm105_vm0, %v95_v26, 0.0 }
  0x31   :  { %v108_v24 = vadd.f32 %v107_v22, %v106_v20  ;;  %v111_v27 = vsel %vm105_vm0, %v79_v21, 0.0  ;;  %v119_v36 = vsel %vm105_vm0, %v96_v31, 0.0 }
  0x33   :  { %v110_v28 = vadd.f32 %v109_v23, %v108_v24 }
  0x35   :  { %v112_v30 = vadd.f32 %v111_v27, %v110_v28 }
  0x37   :  { %v114_v33 = vadd.f32 %v113_v29, %v112_v30 }
  0x39   :  { %v116_v35 = vadd.f32 %v115_v32, %v114_v33 }
  0x3b   :  { %v118_v37 = vadd.f32 %v117_v34, %v116_v35 }
  0x3d   :  { %v120_v38 = vadd.f32 %v119_v36, %v118_v37 }
  0x3f   :  { %121 = vadd.xlane.f32.xlu0 %v120_v38 }
  0xcc   :  { %v122_v39 = vpop.xlane.xlu0 %121 }
  0xcd   :  { %v123_v40 = vrot.slane %v122_v39, 4 }
  0xcf   :  { %v124_v41 = vadd.f32 %v123_v40, %v122_v39 }
  0xd1   :  { %v125_v42 = vrot.slane %v124_v41, 2 }
  0xd3   :  { %v126_v43 = vadd.f32 %v125_v42, %v124_v41 }
  0xd5   :  { %v127_v44 = vrot.slane %v126_v43, 1 }
  0xd7   :  { %v128_v45 = vadd.f32 %v127_v44, %v126_v43 }
  0xd9   :  { %149 = vpush %v128_v45 }
 0x10a   :  { %s150_s5 = spop %149 }
 0x10b   :  { %v130_v46 = vstv %s150_s5 }
 0x10c   :  { %132 = vst.msk [vmem:[#allocation8] sm:$0x1] %vm131_vm1, %v130_v46 }
 0x10d   :  { %210 = shalt.err (!%p207_p6)
}
 0x10e   :  { %s211_s10 = scalar_lea.hbm %s292_s2, 16 }
 0x10f   :  { %p212_p7 = scmp.ne.s32.totalorder %s292_s2, %s211_s10  ;;  %p215_p8 = scmp.lt.u32.totalorder %s211_s10, %s292_s2 }
 0x111   :  { %p217_p9 = pnand %p215_p8, %p212_p7 }
 0x113   :  { %220 = shalt.err (!%p217_p9)
}
 0x114   :  { %142 = dma.vmem_to_hbm [thread:$0]  %s140_s4, 16, %s292_s2, [#allocation5]  }
 0x115   :  { %225 = dma.done.wait [#allocation5], 16  }
 0x116   :  { %226 = vsyncadd [#allocation5], 4294967280 }
 0x117   :  { %146 = vsyncpa [#allocation4], 1 }
 0x118   :  { %147 = vsyncpa [#allocation7], 1 }
 0x119   :  { %148 = vsyncpa [#allocation5], 1 }

</bundles_post_ra>
